<compile_context>
chip_gen: v6e
topology: v6e:2x2x1
jax: 0.10.0
libtpu: 0.0.40
codegen_flags: <defaults>
</compile_context>

<pallas_src>
import functools

import jax
import jax.numpy as jnp
from jax.experimental import pallas as pl
from jax.experimental.pallas import tpu as pltpu


def _pact_threshold_kernel(x_ref, a_ref, b_ref, o_ref, *, eps, alpha):
    # (x - lamda)/kappa/eps folded into per-row affine:  w = x*a + b
    #   a = 1/(kappa*eps),  b = -lamda/(kappa*eps)
    # Math stays in f32 regardless of the HBM-facing dtype.
    w = x_ref[...].astype(jnp.float32) * a_ref[...] + b_ref[...]
    q = jnp.floor(w) * eps
    o_ref[...] = jnp.clip(q, 0.0, alpha).astype(o_ref.dtype)


def _round_up(x, m):
    return -(-x // m) * m


def _pick_tiles(rows, cols, itemsize, *, target_block_bytes=8 << 20,
                max_lane_tile=32768):
    """Pick (rt, ct) block shape for a (rows, cols) slab of `itemsize`-byte data.

    Prefers full-row (fully contiguous HBM DMA) blocks; otherwise a lane tile
    that is a multiple of 128 and, when possible, divides cols (no ragged
    column block).  Keeps >= 2 row blocks when the tensor allows it so both
    v7x TensorCores get work.
    """
    sub = 8 if itemsize >= 4 else (16 if itemsize == 2 else 32)
    bytes_per_row = cols * itemsize

    if bytes_per_row * sub <= target_block_bytes:
        # Full rows: one contiguous DMA per buffer, no masked column blocks.
        ct = cols
        rt = (target_block_bytes // bytes_per_row) // sub * sub
        rt = max(sub, min(rt, _round_up(rows, sub)))
    else:
        # Very wide rows: tile the lane axis with a 128-multiple.
        ct_budget = (target_block_bytes // (sub * itemsize)) // 128 * 128
        ct = max(128, min(ct_budget, max_lane_tile, _round_up(cols, 128)))
        if cols % 128 == 0 and cols % ct != 0:
            d = ct
            while d >= 128:            # prefer an exact divisor of cols
                if cols % d == 0:
                    ct = d
                    break
                d -= 128
        rt = sub

    if rows <= sub:
        rt = rows                      # block equals full row extent (allowed)
    elif -(-rows // rt) * -(-cols // ct) < 2:
        # Keep >= 2 blocks on a parallel axis so a 2-TC chip isn't half idle.
        rt = _round_up(-(-rows // 2), sub)

    return rt, ct


def pact_threshold_act(x, kappa, lamda, *, alpha=1.0, bits=8,
                       target_block_bytes=8 << 20):
    """Forward pass of PACT_ThresholdAct.

    x: (N, C, H, W) float array (f32/bf16/...); kappa/lamda: (C,)-broadcastable.
    Returns clamp(floor(((x - lamda)/kappa)/eps)*eps, 0, alpha),
    eps = alpha/(2**bits-1).  Output dtype matches x.
    """
    N, C, H, W = x.shape
    kappa = jnp.reshape(kappa, (C,)).astype(jnp.float32)
    lamda = jnp.reshape(lamda, (C,)).astype(jnp.float32)

    alpha = float(alpha)
    eps = alpha / (2.0 ** bits - 1.0)

    # Fold per-channel affine + 1/eps into one per-channel f32 scale/shift.
    a_c = 1.0 / (kappa * eps)
    b_c = -lamda / (kappa * eps)

    # Lane-dense 2-D slab: rows = N*C, cols = H*W (pure metadata reshape).
    rows, cols = N * C, H * W
    x2 = x.reshape(rows, cols)
    a2 = jnp.tile(a_c, (N,)).reshape(rows, 1)
    b2 = jnp.tile(b_c, (N,)).reshape(rows, 1)

    itemsize = jnp.dtype(x.dtype).itemsize
    rt, ct = _pick_tiles(rows, cols, itemsize,
                         target_block_bytes=target_block_bytes)
    grid = (pl.cdiv(rows, rt), pl.cdiv(cols, ct))

    # Double-buffered x + out blocks (+ tiny params) with headroom, capped so
    # it always fits v7x's 64 MiB physical VMEM.
    block_bytes = rt * ct * itemsize
    vmem_limit = int(min(48 << 20, max(32 << 20, 4 * block_bytes + (2 << 20))))

    kernel = functools.partial(_pact_threshold_kernel, eps=eps, alpha=alpha)

    out2 = pl.pallas_call(
        kernel,
        out_shape=jax.ShapeDtypeStruct((rows, cols), x.dtype),
        grid_spec=pltpu.PrefetchScalarGridSpec(
            num_scalar_prefetch=0,
            grid=grid,
            in_specs=[
                pl.BlockSpec((rt, ct), lambda i, j: (i, j)),
                # param columns: block index depends only on i (outer axis),
                # so they are fetched once per row block while j iterates.
                pl.BlockSpec((rt, 1), lambda i, j: (i, 0)),
                pl.BlockSpec((rt, 1), lambda i, j: (i, 0)),
            ],
            out_specs=pl.BlockSpec((rt, ct), lambda i, j: (i, j)),
        ),
        compiler_params=pltpu.CompilerParams(
            dimension_semantics=("parallel", "parallel"),
            vmem_limit_bytes=vmem_limit,
        ),
    )(x2, a2, b2)

    return out2.reshape(N, C, H, W)


if __name__ == "__main__":
    key = jax.random.PRNGKey(0)
    kx, kk, kl = jax.random.split(key, 3)

    bits = 8
    alpha = 1.0
    eps = alpha / (2.0 ** bits - 1.0)

    def reference(x, kappa, lamda):
        C = kappa.shape[0]
        k4 = kappa.reshape(1, C, 1, 1).astype(jnp.float32)
        l4 = lamda.reshape(1, C, 1, 1).astype(jnp.float32)
        xf = x.astype(jnp.float32)
        return jnp.clip(jnp.floor(((xf - l4) / k4) / eps) * eps, 0.0, alpha)

    # Per-channel folded-BN parameters (kappa = sigma/gamma must be nonzero).
    C = 4
    kappa = jax.random.uniform(kk, (C,), minval=0.5, maxval=2.0, dtype=jnp.float32)
    lamda = jax.random.uniform(kl, (C,), minval=-0.5, maxval=0.5, dtype=jnp.float32)

    # Case 1: f32, 128-aligned spatial (full-row contiguous block).
    N, H, W = 2, 16, 16
    x = jax.random.normal(kx, (N, C, H, W), dtype=jnp.float32)
    y = jax.block_until_ready(pact_threshold_act(x, kappa, lamda, alpha=alpha, bits=bits))
    # floor() may flip by one quantization step where float rounding order
    # differs (div vs folded multiply), so allow at most one eps of divergence.
    err = float(jnp.max(jnp.abs(y - reference(x, kappa, lamda))))
    assert err <= eps + 1e-6, f"case1 mismatch vs reference: max_err={err}"

    # Case 2: f32, non-128-aligned spatial and rows not a multiple of the row
    # tile (exercises masked edge blocks, no padding anywhere).
    x2 = jax.random.normal(jax.random.PRNGKey(1), (3, C, 9, 7), dtype=jnp.float32)
    y2 = jax.block_until_ready(pact_threshold_act(x2, kappa, lamda, alpha=alpha, bits=bits))
    err2 = float(jnp.max(jnp.abs(y2 - reference(x2, kappa, lamda))))
    assert err2 <= eps + 1e-6, f"case2 mismatch vs reference: max_err={err2}"

    # Case 3: bf16 activations kept bf16 on the HBM side (f32 math in-kernel).
    xb = x.astype(jnp.bfloat16)
    yb = jax.block_until_ready(pact_threshold_act(xb, kappa, lamda, alpha=alpha, bits=bits))
    assert yb.dtype == jnp.bfloat16
    errb = float(jnp.max(jnp.abs(yb.astype(jnp.float32) - reference(xb, kappa, lamda))))
    # one eps of floor flip + bf16 rounding of the stored result
    assert errb <= 2.0 * eps, f"case3 mismatch vs reference: max_err={errb}"

    print("KERNEL_OK")
</pallas_src>

<mosaic_0001>
module attributes {stable_mosaic.version = 11 : i64} {
  func.func @_pact_threshold_kernel(%arg0: i32, %arg1: i32, %arg2: memref<8x256xf32, #tpu.memory_space<vmem>>, %arg3: memref<8x1xf32, #tpu.memory_space<vmem>>, %arg4: memref<8x1xf32, #tpu.memory_space<vmem>>, %arg5: memref<8x256xf32, #tpu.memory_space<vmem>>) attributes {dimension_semantics = [#tpu.dimension_semantics<parallel>, #tpu.dimension_semantics<parallel>], iteration_bounds = array<i64: 1, 1>, scalar_prefetch = 0 : i64, scratch_operands = 0 : i64, tpu.core_type = #tpu.core_type<tc>, window_params = [{transform_indices = @transform_0, window_bounds = array<i64: 8, 256>}, {transform_indices = @transform_1, window_bounds = array<i64: 8, 1>}, {transform_indices = @transform_2, window_bounds = array<i64: 8, 1>}, {transform_indices = @transform_3, window_bounds = array<i64: 8, 256>}]} {
    %c0 = arith.constant 0 : index
    %c0_0 = arith.constant 0 : index
    %0 = vector.load %arg2[%c0, %c0_0] : memref<8x256xf32, #tpu.memory_space<vmem>>, vector<8x256xf32>
    %c0_1 = arith.constant 0 : index
    %c0_2 = arith.constant 0 : index
    %1 = vector.load %arg3[%c0_1, %c0_2] : memref<8x1xf32, #tpu.memory_space<vmem>>, vector<8x1xf32>
    %2 = vector.broadcast %1 : vector<8x1xf32> to vector<8x256xf32>
    %3 = arith.mulf %0, %2 : vector<8x256xf32>
    %c0_3 = arith.constant 0 : index
    %c0_4 = arith.constant 0 : index
    %4 = vector.load %arg4[%c0_3, %c0_4] : memref<8x1xf32, #tpu.memory_space<vmem>>, vector<8x1xf32>
    %5 = vector.broadcast %4 : vector<8x1xf32> to vector<8x256xf32>
    %6 = arith.addf %3, %5 : vector<8x256xf32>
    %7 = math.floor %6 : vector<8x256xf32>
    %cst = arith.constant 0.00392156886 : f32
    %8 = vector.broadcast %cst : f32 to vector<8x256xf32>
    %9 = arith.mulf %7, %8 : vector<8x256xf32>
    %cst_5 = arith.constant 0.000000e+00 : f32
    %cst_6 = arith.constant 1.000000e+00 : f32
    %10 = vector.broadcast %cst_5 : f32 to vector<8x256xf32>
    %11 = arith.maximumf %10, %9 : vector<8x256xf32>
    %12 = vector.broadcast %cst_6 : f32 to vector<8x256xf32>
    %13 = arith.minimumf %12, %11 : vector<8x256xf32>
    %c0_7 = arith.constant 0 : index
    %c0_8 = arith.constant 0 : index
    %14 = vector.load %arg5[%c0_7, %c0_8] : memref<8x256xf32, #tpu.memory_space<vmem>>, vector<8x256xf32>
    tpu.vector_store %arg5[%c0_7, %c0_8], %13 {strides = array<i32>} : memref<8x256xf32, #tpu.memory_space<vmem>>, vector<8x256xf32>,
    return
  }
  func.func @transform_0(%arg0: i32, %arg1: i32) -> (i32, i32) {
    %c0_i32 = arith.constant 0 : i32
    return %arg0, %arg1 : i32, i32
  }
  func.func @transform_1(%arg0: i32, %arg1: i32) -> (i32, i32) {
    %c0_i32 = arith.constant 0 : i32
    %c0_i32_0 = arith.constant 0 : i32
    return %arg0, %c0_i32 : i32, i32
  }
  func.func @transform_2(%arg0: i32, %arg1: i32) -> (i32, i32) {
    %c0_i32 = arith.constant 0 : i32
    %c0_i32_0 = arith.constant 0 : i32
    return %arg0, %c0_i32 : i32, i32
  }
  func.func @transform_3(%arg0: i32, %arg1: i32) -> (i32, i32) {
    %c0_i32 = arith.constant 0 : i32
    return %arg0, %arg1 : i32, i32
  }
}

</mosaic_0001>

<bundles_post_ra>
// kernel: tpu_custom_call.1
= control target key start
LH: loop header
LB: loop body
LE: loop exit
PB: predicated region body
PF: predicated region fallthrough
CT: control target
= control target key end

     0   :  { %v82_v1 = vmov 0   ;;  %s119_s0 = inlined_call_operand.vmem [shape: f32[8,256], index: 0, kind: input, shape index: {}]   ;;  %s120_s1 = inlined_call_operand.vmem [shape: f32[8,1], index: 1, kind: input, shape index: {}]   ;;  %s121_s2 = inlined_call_operand.vmem [shape: f32[8,1], index: 2, kind: input, shape index: {}]   ;;  %s122_s3 = inlined_call_operand.hbm [shape: f32[8,256], index: 3, kind: output, shape index: {}]  }
   0x1   :  { %v17_v0 = vld [vmem:[%s120_s1] sm:$0xff]  ;;  %59 = vset.pattern.permute.xlu0 %v82_v1 }
   0x2   :  { %8 = vsyncpa [#allocation3], 0  ;;  %20 = vperm.xlu0 %59, %v17_v0   ;;  %v25_v2 = vld [vmem:[%s121_s2] sm:$0xff]  ;;  %v16_v5 = vld [vmem:[%s119_s0 + $0x8] sm:$0xff]  ;;  %s83_s1 = smov [#allocation2]  }
   0x3   :  { %v15_v4 = vld [vmem:[%s119_s0] sm:$0xff]  ;;  %s49_s2 = sshll.u32 %s83_s1, 4  ;;  %s50_s2 = int_to_ptr.vmem [resolvable:$true] %s49_s2 }
   0x4   :  { %s60_s20 = scalar_lea.vmem %s50_s2, 256  ;;  %p65_p1 = scmp.lt.s32.totalorder %s50_s2, %s50_s2 }
   0x5   :  { %p61_p0 = scmp.ne.s32.totalorder %s50_s2, %s60_s20  ;;  %p66_p2 = scmp.lt.s32.totalorder %s60_s20, %s60_s20 }
   0x6   :  { %28 = vperm.xlu0 %59, %v25_v2  }
   0x7   :  { %p67_p3 = por %p66_p2, %p65_p1 }
   0x9   :  { %p68_p4 = pnand %p67_p3, %p61_p0 }
  0x7d   :  { %v21_v3 = vpop.permute.xlu0 %20 }
  0x7e   :  { %v23_v6 = vmul.f32 %v21_v3, %v15_v4  ;;  %v24_v7 = vmul.f32 %v21_v3, %v16_v5 }
  0x81   :  { %v29_v8 = vpop.permute.xlu0 %28 }
  0x82   :  { %v31_v9 = vadd.f32 %v29_v8, %v23_v6  ;;  %v32_v10 = vadd.f32 %v29_v8, %v24_v7 }
  0x84   :  { %v33_v11 = vfloor.f32 %v31_v9  ;;  %v34_v12 = vfloor.f32 %v32_v10 }
  0x86   :  { %v35_v13 = vmul.f32 0.003921569, %v33_v11  ;;  %v36_v14 = vmul.f32 0.003921569, %v34_v12 }
  0x88   :  { %v37_v15 = vmax.f32 %v35_v13, 0.0  ;;  %v38_v16 = vmax.f32 %v36_v14, 0.0 }
  0x8a   :  { %v39_v17 = vmin.f32 %v37_v15, 1.0  ;;  %v40_v18 = vmin.f32 %v38_v16, 1.0 }
  0x8c   :  { %41 = vst [vmem:[#allocation2] sm:$0xff] %v39_v17  ;;  %42 = vst [vmem:[#allocation2 + $0x8] sm:$0xff] %v40_v18 }
  0x8d   :  { %71 = shalt.err (!%p68_p4)
}
  0x8e   :  { %52 = dma.vmem_to_hbm [thread:$0]  %s50_s2, 256, %s122_s3, [#allocation3]  }
  0x8f   :  { %80 = dma.done.wait [#allocation3], 256  }
  0x90   :  { %81 = vsyncadd [#allocation3], 4294967040 }
  0x91   :  { %56 = vsyncpa [#allocation3], 1 }

</bundles_post_ra>
